<compile_context>
chip_gen: v5e
topology: v5e:2x2
jax: 0.10.0
libtpu: 0.0.40
codegen_flags: <defaults>
</compile_context>

<pallas_src>
import functools

import jax
import jax.numpy as jnp
from jax.experimental import pallas as pl
from jax.experimental.pallas import tpu as pltpu

H_SIZES = [768, 256, 64, 2]
NEG_SLOPE = 0.01              # torch.nn.LeakyReLU default negative_slope


def _leaky(z):
    return jnp.where(z >= 0, z, NEG_SLOPE * z)


def _round_up(n, m):
    return ((n + m - 1) // m) * m


def _choose_tile_b(b):
    """Batch tile policy.

    * b < 512   : one block covering the whole batch (block dim == array dim,
                  legal for any b, no padding / partial blocks).
    * <= 4096   : ~4 grid steps (>=2 per v7x TensorCore) so the per-core
                  pipeline keeps double-buffering; neutral on v5e/v6e.
    * otherwise : 1024-row tiles (3 MiB f32 x-tile, 6 MiB double-buffered).
    """
    if b < 512:
        return b
    if b <= 4096:
        return _round_up(pl.cdiv(b, 4), 8)
    return 1024


def mlp_kernel(x_ref, w1_ref, b1_ref, w2_ref, b2_ref, w3_ref, b3_ref, o_ref,
               *, matmul_dtype):
    # x arrives as f32 straight from HBM; cast to bf16 here (free under the DMA).
    x = x_ref[...].astype(matmul_dtype)
    # Layer 1: (TB,768)bf16 @ (768,256)bf16 -> f32 acc; bias + LeakyReLU in f32.
    h = jnp.dot(x, w1_ref[...], preferred_element_type=jnp.float32)
    h = _leaky(h + b1_ref[...])
    # Layer 2: keep the MXU on its bf16 path.
    h = jnp.dot(h.astype(matmul_dtype), w2_ref[...],
                preferred_element_type=jnp.float32)
    h = _leaky(h + b2_ref[...])
    # Layer 3: real 2-column output (module applies activation after every Linear).
    h = jnp.dot(h.astype(matmul_dtype), w3_ref[...],
                preferred_element_type=jnp.float32)
    o_ref[...] = _leaky(h + b3_ref[...]).astype(o_ref.dtype)


def mlp_forward(x, params, *, tile_b=None, matmul_dtype=jnp.bfloat16):
    B, D = x.shape
    assert D == H_SIZES[0]
    (w1, b1), (w2, b2), (w3, b3) = params
    out_dtype = x.dtype
    d_out = H_SIZES[-1]

    if tile_b is None:
        tile_b = _choose_tile_b(B)
    tile_b = min(tile_b, B)
    if tile_b != B:
        tile_b = _round_up(tile_b, 8)     # sublane-legal; trailing block may be partial

    grid = (pl.cdiv(B, tile_b),)

    # Weights are tiny -> pre-cast to bf16. Biases (and all elementwise math) stay f32.
    w1 = w1.astype(matmul_dtype)
    w2 = w2.astype(matmul_dtype)
    w3 = w3.astype(matmul_dtype)
    b1 = b1.reshape(1, -1).astype(jnp.float32)
    b2 = b2.reshape(1, -1).astype(jnp.float32)
    b3 = b3.reshape(1, -1).astype(jnp.float32)

    def invariant(shape):
        # Grid-invariant weight/bias tiles (same block every step).
        return pl.BlockSpec(shape, lambda i: (0,) * len(shape))

    w_itemsize = jnp.dtype(matmul_dtype).itemsize
    weight_elems = (H_SIZES[0] * H_SIZES[1] + H_SIZES[1] * H_SIZES[2]
                    + H_SIZES[2] * H_SIZES[3])
    flops = 2 * B * weight_elems
    bytes_accessed = (B * H_SIZES[0] * jnp.dtype(x.dtype).itemsize   # f32 x read
                      + weight_elems * w_itemsize                     # bf16 weights
                      + (H_SIZES[1] + H_SIZES[2] + H_SIZES[3]) * 4    # f32 biases
                      + B * d_out * jnp.dtype(out_dtype).itemsize)    # (B,2) output

    out = pl.pallas_call(
        functools.partial(mlp_kernel, matmul_dtype=matmul_dtype),
        out_shape=jax.ShapeDtypeStruct((B, d_out), out_dtype),
        grid_spec=pltpu.PrefetchScalarGridSpec(
            num_scalar_prefetch=0,
            grid=grid,
            in_specs=[
                pl.BlockSpec((tile_b, H_SIZES[0]), lambda i: (i, 0)),
                invariant(w1.shape), invariant(b1.shape),
                invariant(w2.shape), invariant(b2.shape),
                invariant(w3.shape), invariant(b3.shape),
            ],
            out_specs=pl.BlockSpec((tile_b, d_out), lambda i: (i, 0)),
        ),
        compiler_params=pltpu.CompilerParams(
            dimension_semantics=("parallel",),
            vmem_limit_bytes=32 * 1024 * 1024,   # ample on v5e/v6e, safe on v7x (64 MiB phys)
        ),
        cost_estimate=pl.CostEstimate(
            flops=flops, transcendentals=0, bytes_accessed=bytes_accessed),
    )(x, w1, b1, w2, b2, w3, b3)
    return out


def init_params(key, h_sizes=H_SIZES, dtype=jnp.float32):
    """Deterministic init mimicking torch.nn.Linear default (U[-1/sqrt(fan_in), +])."""
    params = []
    for k in range(len(h_sizes) - 1):
        fan_in, fan_out = h_sizes[k], h_sizes[k + 1]
        key, kw, kb = jax.random.split(key, 3)
        bound = 1.0 / jnp.sqrt(fan_in)
        # stored as (in, out) so the kernel does x @ W
        w = jax.random.uniform(kw, (fan_in, fan_out), dtype, -bound, bound)
        b = jax.random.uniform(kb, (fan_out,), dtype, -bound, bound)
        params.append((w, b))
    return params


def mlp_reference(x, params, matmul_dtype=jnp.float32):
    h = x
    for w, b in params:
        h = jnp.dot(h.astype(matmul_dtype), w.astype(matmul_dtype),
                    preferred_element_type=jnp.float32)
        h = h + b.astype(jnp.float32)
        h = jnp.where(h >= 0, h, NEG_SLOPE * h)
    return h.astype(x.dtype)


# TODO(synk): the PyTorch `fit`/`predict` training loops are host-side utilities
# and are intentionally not translated; only the forward pass is a kernel.

if __name__ == "__main__":
    key = jax.random.PRNGKey(0)
    kx, kp = jax.random.split(key)
    params = init_params(kp)

    # Small batch: single full-batch block (no padding, no partial blocks).
    B = 4
    x = jax.random.normal(kx, (B, H_SIZES[0]), jnp.float32)
    out = jax.block_until_ready(mlp_forward(x, params))
    assert out.shape == (B, H_SIZES[-1])
    ref_bf16 = mlp_reference(x, params, matmul_dtype=jnp.bfloat16)
    assert jnp.allclose(out, ref_bf16, atol=1e-3, rtol=1e-3), "mismatch vs bf16 reference"
    ref_f32 = mlp_reference(x, params, matmul_dtype=jnp.float32)
    assert jnp.allclose(out, ref_f32, atol=5e-2, rtol=5e-2), "mismatch vs f32 reference"

    # Ragged multi-tile batch: 4 grid steps, trailing block partial (Pallas-masked).
    B2 = 600
    x2 = jax.random.normal(kx, (B2, H_SIZES[0]), jnp.float32)
    out2 = jax.block_until_ready(mlp_forward(x2, params))
    assert out2.shape == (B2, H_SIZES[-1])
    ref2 = mlp_reference(x2, params, matmul_dtype=jnp.bfloat16)
    assert jnp.allclose(out2, ref2, atol=1e-3, rtol=1e-3), "mismatch vs bf16 reference (B=600)"

    print("KERNEL_OK")
</pallas_src>

<mosaic_0001>
module attributes {stable_mosaic.version = 11 : i64} {
  func.func @mlp_kernel(%arg0: i32, %arg1: memref<4x768xf32, #tpu.memory_space<vmem>>, %arg2: memref<768x256xbf16, #tpu.memory_space<vmem>>, %arg3: memref<1x256xf32, #tpu.memory_space<vmem>>, %arg4: memref<256x64xbf16, #tpu.memory_space<vmem>>, %arg5: memref<1x64xf32, #tpu.memory_space<vmem>>, %arg6: memref<64x2xbf16, #tpu.memory_space<vmem>>, %arg7: memref<1x2xf32, #tpu.memory_space<vmem>>, %arg8: memref<4x2xf32, #tpu.memory_space<vmem>>) attributes {dimension_semantics = [#tpu.dimension_semantics<parallel>], iteration_bounds = array<i64: 1>, scalar_prefetch = 0 : i64, scratch_operands = 0 : i64, tpu.core_type = #tpu.core_type<tc>, window_params = [{transform_indices = @transform_0, window_bounds = array<i64: 4, 768>}, {pipeline_mode = #tpu.pipeline_mode<synchronous>, transform_indices = @transform_1, window_bounds = array<i64: 768, 256>}, {pipeline_mode = #tpu.pipeline_mode<synchronous>, transform_indices = @transform_2, window_bounds = array<i64: 1, 256>}, {pipeline_mode = #tpu.pipeline_mode<synchronous>, transform_indices = @transform_3, window_bounds = array<i64: 256, 64>}, {pipeline_mode = #tpu.pipeline_mode<synchronous>, transform_indices = @transform_4, window_bounds = array<i64: 1, 64>}, {pipeline_mode = #tpu.pipeline_mode<synchronous>, transform_indices = @transform_5, window_bounds = array<i64: 64, 2>}, {pipeline_mode = #tpu.pipeline_mode<synchronous>, transform_indices = @transform_6, window_bounds = array<i64: 1, 2>}, {transform_indices = @transform_7, window_bounds = array<i64: 4, 2>}]} {
    %c0 = arith.constant 0 : index
    %c0_0 = arith.constant 0 : index
    %0 = vector.load %arg1[%c0, %c0_0] : memref<4x768xf32, #tpu.memory_space<vmem>>, vector<4x768xf32>
    %1 = arith.truncf %0 : vector<4x768xf32> to vector<4x768xbf16>
    %c0_1 = arith.constant 0 : index
    %c0_2 = arith.constant 0 : index
    %2 = vector.load %arg2[%c0_1, %c0_2] : memref<768x256xbf16, #tpu.memory_space<vmem>>, vector<768x256xbf16>
    %cst = arith.constant dense<0.000000e+00> : vector<4x256xf32>
    %3 = tpu.matmul %1, %2, %cst {dimension_numbers = #tpu.dot_dimension_numbers<[1], [0], [0], [1], [0, 0, 1, 1], [], []>} : vector<4x768xbf16>, vector<768x256xbf16>, vector<4x256xf32> -> vector<4x256xf32>
    %c0_3 = arith.constant 0 : index
    %c0_4 = arith.constant 0 : index
    %4 = vector.load %arg3[%c0_3, %c0_4] : memref<1x256xf32, #tpu.memory_space<vmem>>, vector<1x256xf32>
    %5 = vector.broadcast %4 : vector<1x256xf32> to vector<4x256xf32>
    %6 = arith.addf %3, %5 : vector<4x256xf32>
    %cst_5 = arith.constant 0.000000e+00 : f32
    %7 = vector.broadcast %cst_5 : f32 to vector<4x256xf32>
    %8 = arith.cmpf oge, %6, %7 : vector<4x256xf32>
    %cst_6 = arith.constant 0.00999999977 : f32
    %9 = vector.broadcast %cst_6 : f32 to vector<4x256xf32>
    %10 = arith.mulf %9, %6 : vector<4x256xf32>
    %11 = arith.select %8, %6, %10 : vector<4x256xi1>, vector<4x256xf32>
    %12 = arith.truncf %11 : vector<4x256xf32> to vector<4x256xbf16>
    %c0_7 = arith.constant 0 : index
    %c0_8 = arith.constant 0 : index
    %13 = vector.load %arg4[%c0_7, %c0_8] : memref<256x64xbf16, #tpu.memory_space<vmem>>, vector<256x64xbf16>
    %cst_9 = arith.constant dense<0.000000e+00> : vector<4x64xf32>
    %14 = tpu.matmul %12, %13, %cst_9 {dimension_numbers = #tpu.dot_dimension_numbers<[1], [0], [0], [1], [0, 0, 1, 1], [], []>} : vector<4x256xbf16>, vector<256x64xbf16>, vector<4x64xf32> -> vector<4x64xf32>
    %c0_10 = arith.constant 0 : index
    %c0_11 = arith.constant 0 : index
    %15 = vector.load %arg5[%c0_10, %c0_11] : memref<1x64xf32, #tpu.memory_space<vmem>>, vector<1x64xf32>
    %16 = vector.broadcast %15 : vector<1x64xf32> to vector<4x64xf32>
    %17 = arith.addf %14, %16 : vector<4x64xf32>
    %cst_12 = arith.constant 0.000000e+00 : f32
    %18 = vector.broadcast %cst_12 : f32 to vector<4x64xf32>
    %19 = arith.cmpf oge, %17, %18 : vector<4x64xf32>
    %cst_13 = arith.constant 0.00999999977 : f32
    %20 = vector.broadcast %cst_13 : f32 to vector<4x64xf32>
    %21 = arith.mulf %20, %17 : vector<4x64xf32>
    %22 = arith.select %19, %17, %21 : vector<4x64xi1>, vector<4x64xf32>
    %23 = arith.truncf %22 : vector<4x64xf32> to vector<4x64xbf16>
    %c0_14 = arith.constant 0 : index
    %c0_15 = arith.constant 0 : index
    %24 = vector.load %arg6[%c0_14, %c0_15] : memref<64x2xbf16, #tpu.memory_space<vmem>>, vector<64x2xbf16>
    %cst_16 = arith.constant dense<0.000000e+00> : vector<4x2xf32>
    %25 = tpu.matmul %23, %24, %cst_16 {dimension_numbers = #tpu.dot_dimension_numbers<[1], [0], [0], [1], [0, 0, 1, 1], [], []>} : vector<4x64xbf16>, vector<64x2xbf16>, vector<4x2xf32> -> vector<4x2xf32>
    %c0_17 = arith.constant 0 : index
    %c0_18 = arith.constant 0 : index
    %26 = vector.load %arg7[%c0_17, %c0_18] : memref<1x2xf32, #tpu.memory_space<vmem>>, vector<1x2xf32>
    %27 = vector.broadcast %26 : vector<1x2xf32> to vector<4x2xf32>
    %28 = arith.addf %25, %27 : vector<4x2xf32>
    %cst_19 = arith.constant 0.000000e+00 : f32
    %29 = vector.broadcast %cst_19 : f32 to vector<4x2xf32>
    %30 = arith.cmpf oge, %28, %29 : vector<4x2xf32>
    %cst_20 = arith.constant 0.00999999977 : f32
    %31 = vector.broadcast %cst_20 : f32 to vector<4x2xf32>
    %32 = arith.mulf %31, %28 : vector<4x2xf32>
    %33 = arith.select %30, %28, %32 : vector<4x2xi1>, vector<4x2xf32>
    %c0_21 = arith.constant 0 : index
    %c0_22 = arith.constant 0 : index
    %34 = vector.load %arg8[%c0_21, %c0_22] : memref<4x2xf32, #tpu.memory_space<vmem>>, vector<4x2xf32>
    tpu.vector_store %arg8[%c0_21, %c0_22], %33 {strides = array<i32>} : memref<4x2xf32, #tpu.memory_space<vmem>>, vector<4x2xf32>,
    return
  }
  func.func @transform_0(%arg0: i32) -> (i32, i32) {
    %c0_i32 = arith.constant 0 : i32
    %c0_i32_0 = arith.constant 0 : i32
    return %arg0, %c0_i32 : i32, i32
  }
  func.func @transform_1(%arg0: i32) -> (i32, i32) {
    %c0_i32 = arith.constant 0 : i32
    %c0_i32_0 = arith.constant 0 : i32
    %c0_i32_1 = arith.constant 0 : i32
    return %c0_i32, %c0_i32_0 : i32, i32
  }
  func.func @transform_2(%arg0: i32) -> (i32, i32) {
    %c0_i32 = arith.constant 0 : i32
    %c0_i32_0 = arith.constant 0 : i32
    %c0_i32_1 = arith.constant 0 : i32
    return %c0_i32, %c0_i32_0 : i32, i32
  }
  func.func @transform_3(%arg0: i32) -> (i32, i32) {
    %c0_i32 = arith.constant 0 : i32
    %c0_i32_0 = arith.constant 0 : i32
    %c0_i32_1 = arith.constant 0 : i32
    return %c0_i32, %c0_i32_0 : i32, i32
  }
  func.func @transform_4(%arg0: i32) -> (i32, i32) {
    %c0_i32 = arith.constant 0 : i32
    %c0_i32_0 = arith.constant 0 : i32
    %c0_i32_1 = arith.constant 0 : i32
    return %c0_i32, %c0_i32_0 : i32, i32
  }
  func.func @transform_5(%arg0: i32) -> (i32, i32) {
    %c0_i32 = arith.constant 0 : i32
    %c0_i32_0 = arith.constant 0 : i32
    %c0_i32_1 = arith.constant 0 : i32
    return %c0_i32, %c0_i32_0 : i32, i32
  }
  func.func @transform_6(%arg0: i32) -> (i32, i32) {
    %c0_i32 = arith.constant 0 : i32
    %c0_i32_0 = arith.constant 0 : i32
    %c0_i32_1 = arith.constant 0 : i32
    return %c0_i32, %c0_i32_0 : i32, i32
  }
  func.func @transform_7(%arg0: i32) -> (i32, i32) {
    %c0_i32 = arith.constant 0 : i32
    %c0_i32_0 = arith.constant 0 : i32
    return %arg0, %c0_i32 : i32, i32
  }
}

</mosaic_0001>

<bundles_post_ra>
// kernel: tpu_custom_call.1
= control target key start
LH: loop header
LB: loop body
LE: loop exit
PB: predicated region body
PF: predicated region fallthrough
CT: control target
= control target key end

     0   :  { %12 = vsyncpa [#allocation3], 0  ;;  %s1655_s27 = smov [#allocation2]   ;;  %s1656_s29 = smov 128   ;;  %s1806_s0 = inlined_call_operand.vmem [shape: f32[4,768], index: 0, kind: input, shape index: {}]   ;;  %s1807_s1 = inlined_call_operand.hbm [shape: bf16[768,256], index: 1, kind: input, shape index: {}]   ;;  %s1808_s2 = inlined_call_operand.vmem [shape: f32[1,256], index: 2, kind: input, shape index: {}]   ;;  %s1809_s3 = inlined_call_operand.vmem [shape: bf16[256,64], index: 3, kind: input, shape index: {}]   ;;  %s1810_s4 = inlined_call_operand.vmem [shape: f32[1,64], index: 4, kind: input, shape index: {}]   ;;  %s1811_s5 = inlined_call_operand.vmem [shape: bf16[64,2], index: 5, kind: input, shape index: {}]   ;;  %s1812_s6 = inlined_call_operand.vmem [shape: f32[1,2], index: 6, kind: input, shape index: {}]   ;;  %s1813_s7 = inlined_call_operand.vmem [shape: f32[4,2], index: 7, kind: output, shape index: {}]  }
   0x1   :  { %s19_s26 = sshll.u32 %s1807_s1, 4  ;;  %s21_s28 = sshll.u32 %s1655_s27, 4  ;;  %s20_s26 = int_to_ptr.hbm [resolvable:$true] %s19_s26  ;;  %s22_s28 = int_to_ptr.vmem [resolvable:$true] %s21_s28 }
   0x2   :  { %s1657_s30 = smov 8  }
   0x3   :  { %27 = dma.hbm_to_vmem [thread:$0]  %s20_s26, 12288, %s22_s28, [#allocation3], %s1656_s29, %s1656_s29, %s1657_s30  }
   0x4   :  { %1653 = dma.done.wait [#allocation3], 12288  }
   0x5   :  { %1654 = vsyncadd [#allocation3], 4294955008  ;;  %v1101_v0 = vld [vmem:[#allocation2 + $0x70] sm:$0xf]  ;;  %v1523_v1 = vld [vmem:[#allocation2 + $0x74] sm:$0xf0] }
   0x6   :  { %v1165_v2 = vld [vmem:[#allocation2 + $0xf0] sm:$0xf]  ;;  %v1102_v3 = vor.u32 %v1523_v1, %v1101_v0  ;;  %v1539_v4 = vld [vmem:[#allocation2 + $0xf4] sm:$0xf0]  ;;  %v1093_v11 = vld [vmem:[#allocation2 + $0x60] sm:$0xf] }
   0x7   :  { %v1229_v5 = vld [vmem:[#allocation2 + $0x170] sm:$0xf]  ;;  %v1555_v6 = vld [vmem:[#allocation2 + $0x174] sm:$0xf0]  ;;  %v1166_v7 = vor.u32 %v1539_v4, %v1165_v2  ;;  %v1521_v13 = vld [vmem:[#allocation2 + $0x64] sm:$0xf0] }
   0x8   :  { %v1230_v8 = vor.u32 %v1555_v6, %v1229_v5  ;;  %v1293_v9 = vld [vmem:[#allocation2 + $0x1f0] sm:$0xf]  ;;  %v1571_v10 = vld [vmem:[#allocation2 + $0x1f4] sm:$0xf0]  ;;  %654 = vmatpush.bf16.msra.mxu0 %v1102_v3  ;;  %v1157_v14 = vld [vmem:[#allocation2 + $0xe0] sm:$0xf]  ;;  %v1094_v16 = vor.u32 %v1521_v13, %v1093_v11 }
   0x9   :  { %v1294_v12 = vor.u32 %v1571_v10, %v1293_v9  ;;  %v1537_v15 = vld [vmem:[#allocation2 + $0xe4] sm:$0xf0]  ;;  %667 = vmatpush.bf16.msra.mxu1 %v1166_v7  ;;  %v1221_v18 = vld [vmem:[#allocation2 + $0x160] sm:$0xf]  ;;  %v1085_v23 = vld [vmem:[#allocation2 + $0x50] sm:$0xf] }
   0xa   :  { %680 = vmatpush.bf16.msra.mxu2 %v1230_v8  ;;  %v1158_v17 = vor.u32 %v1537_v15, %v1157_v14  ;;  %v1553_v19 = vld [vmem:[#allocation2 + $0x164] sm:$0xf0]  ;;  %v1285_v20 = vld [vmem:[#allocation2 + $0x1e0] sm:$0xf]  ;;  %v1519_v24 = vld [vmem:[#allocation2 + $0x54] sm:$0xf0] }
   0xb   :  { %693 = vmatpush.bf16.msra.mxu3 %v1294_v12  ;;  %v1222_v21 = vor.u32 %v1553_v19, %v1221_v18  ;;  %v1569_v22 = vld [vmem:[#allocation2 + $0x1e4] sm:$0xf0]  ;;  %v1149_v26 = vld [vmem:[#allocation2 + $0xd0] sm:$0xf]  ;;  %v1535_v27 = vld [vmem:[#allocation2 + $0xd4] sm:$0xf0]  ;;  %v1086_v29 = vor.u32 %v1519_v24, %v1085_v23 }
   0xc   :  { %v1286_v25 = vor.u32 %v1569_v22, %v1285_v20  ;;  %v1213_v28 = vld [vmem:[#allocation2 + $0x150] sm:$0xf]  ;;  %655 = vmatpush.bf16.msra.mxu0 %v1094_v16  ;;  %v1551_v30 = vld [vmem:[#allocation2 + $0x154] sm:$0xf0]  ;;  %v1150_v33 = vor.u32 %v1535_v27, %v1149_v26  ;;  %v1077_v35 = vld [vmem:[#allocation2 + $0x40] sm:$0xf] }
   0xd   :  { %v1277_v31 = vld [vmem:[#allocation2 + $0x1d0] sm:$0xf]  ;;  %v1567_v32 = vld [vmem:[#allocation2 + $0x1d4] sm:$0xf0]  ;;  %668 = vmatpush.bf16.msra.mxu1 %v1158_v17  ;;  %v1214_v34 = vor.u32 %v1551_v30, %v1213_v28  ;;  %v1517_v36 = vld [vmem:[#allocation2 + $0x44] sm:$0xf0] }
   0xe   :  { %681 = vmatpush.bf16.msra.mxu2 %v1222_v21  ;;  %v1141_v37 = vld [vmem:[#allocation2 + $0xc0] sm:$0xf]  ;;  %v1278_v38 = vor.u32 %v1567_v32, %v1277_v31  ;;  %v1533_v39 = vld [vmem:[#allocation2 + $0xc4] sm:$0xf0]  ;;  %v1078_v44 = vor.u32 %v1517_v36, %v1077_v35  ;;  %v1069_v47 = vld [vmem:[#allocation2 + $0x30] sm:$0xf] }
   0xf   :  { %694 = vmatpush.bf16.msra.mxu3 %v1286_v25  ;;  %v1205_v40 = vld [vmem:[#allocation2 + $0x140] sm:$0xf]  ;;  %v1549_v41 = vld [vmem:[#allocation2 + $0x144] sm:$0xf0]  ;;  %v1142_v45 = vor.u32 %v1533_v39, %v1141_v37  ;;  %v1515_v48 = vld [vmem:[#allocation2 + $0x34] sm:$0xf0] }
  0x10   :  { %v1269_v42 = vld [vmem:[#allocation2 + $0x1c0] sm:$0xf]  ;;  %v1565_v43 = vld [vmem:[#allocation2 + $0x1c4] sm:$0xf0]  ;;  %656 = vmatpush.bf16.msra.mxu0 %v1086_v29  ;;  %v1206_v46 = vor.u32 %v1549_v41, %v1205_v40  ;;  %v1133_v49 = vld [vmem:[#allocation2 + $0xb0] sm:$0xf]  ;;  %v1070_v56 = vor.u32 %v1515_v48, %v1069_v47 }
  0x11   :  { %669 = vmatpush.bf16.msra.mxu1 %v1150_v33  ;;  %v1270_v50 = vor.u32 %v1565_v43, %v1269_v42  ;;  %v1531_v51 = vld [vmem:[#allocation2 + $0xb4] sm:$0xf0]  ;;  %v1197_v52 = vld [vmem:[#allocation2 + $0x130] sm:$0xf]  ;;  %v1061_v59 = vld [vmem:[#allocation2 + $0x20] sm:$0xf] }
  0x12   :  { %682 = vmatpush.bf16.msra.mxu2 %v1214_v34  ;;  %v1547_v53 = vld [vmem:[#allocation2 + $0x134] sm:$0xf0]  ;;  %v1261_v54 = vld [vmem:[#allocation2 + $0x1b0] sm:$0xf]  ;;  %v1134_v57 = vor.u32 %v1531_v51, %v1133_v49  ;;  %v1513_v60 = vld [vmem:[#allocation2 + $0x24] sm:$0xf0] }
  0x13   :  { %695 = vmatpush.bf16.msra.mxu3 %v1278_v38  ;;  %v1563_v55 = vld [vmem:[#allocation2 + $0x1b4] sm:$0xf0]  ;;  %v1198_v58 = vor.u32 %v1547_v53, %v1197_v52  ;;  %v1125_v61 = vld [vmem:[#allocation2 + $0xa0] sm:$0xf]  ;;  %v1529_v63 = vld [vmem:[#allocation2 + $0xa4] sm:$0xf0]  ;;  %v1062_v4 = vor.u32 %v1513_v60, %v1061_v59 }
  0x14   :  { %657 = vmatpush.bf16.msra.mxu0 %v1078_v44  ;;  %v1262_v62 = vor.u32 %v1563_v55, %v1261_v54  ;;  %v1189_v0 = vld [vmem:[#allocation2 + $0x120] sm:$0xf]  ;;  %v1545_v1 = vld [vmem:[#allocation2 + $0x124] sm:$0xf0]  ;;  %v1126_v5 = vor.u32 %v1529_v63, %v1125_v61  ;;  %v1053_v7 = vld [vmem:[#allocation2 + $0x10] sm:$0xf] }
  0x15   :  { %670 = vmatpush.bf16.msra.mxu1 %v1142_v45  ;;  %v1253_v2 = vld [vmem:[#allocation2 + $0x1a0] sm:$0xf]  ;;  %v1561_v3 = vld [vmem:[#allocation2 + $0x1a4] sm:$0xf0]  ;;  %v1190_v6 = vor.u32 %v1545_v1, %v1189_v0  ;;  %v1511_v8 = vld [vmem:[#allocation2 + $0x14] sm:$0xf0] }
  0x16   :  { %683 = vmatpush.bf16.msra.mxu2 %v1206_v46  ;;  %v1117_v9 = vld [vmem:[#allocation2 + $0x90] sm:$0xf]  ;;  %v1254_v10 = vor.u32 %v1561_v3, %v1253_v2  ;;  %v1527_v11 = vld [vmem:[#allocation2 + $0x94] sm:$0xf0]  ;;  %v1054_v16 = vor.u32 %v1511_v8, %v1053_v7  ;;  %v1045_v17 = vld [vmem:[#allocation2] sm:$0xf] }
  0x17   :  { %696 = vmatpush.bf16.msra.mxu3 %v1270_v50  ;;  %v1181_v12 = vld [vmem:[#allocation2 + $0x110] sm:$0xf]  ;;  %v1543_v13 = vld [vmem:[#allocation2 + $0x114] sm:$0xf0]  ;;  %v1509_v18 = vld [vmem:[#allocation2 + $0x4] sm:$0xf0]  ;;  %v1118_v19 = vor.u32 %v1527_v11, %v1117_v9 }
  0x18   :  { %658 = vmatpush.bf16.msra.mxu0 %v1070_v56  ;;  %v1245_v14 = vld [vmem:[#allocation2 + $0x190] sm:$0xf]  ;;  %v1559_v15 = vld [vmem:[#allocation2 + $0x194] sm:$0xf0]  ;;  %v1182_v20 = vor.u32 %v1543_v13, %v1181_v12  ;;  %v1109_v21 = vld [vmem:[#allocation2 + $0x80] sm:$0xf]  ;;  %v1046_v31 = vor.u32 %v1509_v18, %v1045_v17 }
  0x19   :  { %671 = vmatpush.bf16.msra.mxu1 %v1134_v57  ;;  %v1525_v22 = vld [vmem:[#allocation2 + $0x84] sm:$0xf0]  ;;  %v1173_v23 = vld [vmem:[#allocation2 + $0x100] sm:$0xf]  ;;  %v1246_v24 = vor.u32 %v1559_v15, %v1245_v14  ;;  %v1357_v28 = vld [vmem:[#allocation2 + $0x270] sm:$0xf] }
  0x1a   :  { %684 = vmatpush.bf16.msra.mxu2 %v1198_v58  ;;  %v1541_v25 = vld [vmem:[#allocation2 + $0x104] sm:$0xf0]  ;;  %v1237_v26 = vld [vmem:[#allocation2 + $0x180] sm:$0xf]  ;;  %v1587_v29 = vld [vmem:[#allocation2 + $0x274] sm:$0xf0]  ;;  %v1110_v35 = vor.u32 %v1525_v22, %v1109_v21 }
  0x1b   :  { %697 = vmatpush.bf16.msra.mxu3 %v1262_v62  ;;  %v1557_v27 = vld [vmem:[#allocation2 + $0x184] sm:$0xf0]  ;;  %v1421_v30 = vld [vmem:[#allocation2 + $0x2f0] sm:$0xf]  ;;  %v1603_v32 = vld [vmem:[#allocation2 + $0x2f4] sm:$0xf0]  ;;  %v1174_v36 = vor.u32 %v1541_v25, %v1173_v23  ;;  %v1358_v40 = vor.u32 %v1587_v29, %v1357_v28 }
  0x1c   :  { %659 = vmatpush.bf16.msra.mxu0 %v1062_v4  ;;  %v1522_v33 = vld [vmem:[#allocation2 + $0x74] sm:$0xf]  ;;  %v1103_v34 = vld [vmem:[#allocation2 + $0x78] sm:$0xf0]  ;;  %v1238_v39 = vor.u32 %v1557_v27, %v1237_v26  ;;  %v1422_v41 = vor.u32 %v1603_v32, %v1421_v30  ;;  %v1349_v43 = vld [vmem:[#allocation2 + $0x260] sm:$0xf] }
  0x1d   :  { %672 = vmatpush.bf16.msra.mxu1 %v1126_v5  ;;  %v1538_v37 = vld [vmem:[#allocation2 + $0xf4] sm:$0xf]  ;;  %v1167_v38 = vld [vmem:[#allocation2 + $0xf8] sm:$0xf0]  ;;  %v1106_v42 = vor.u32 %v1522_v33, %v1103_v34  ;;  %v1585_v44 = vld [vmem:[#allocation2 + $0x264] sm:$0xf0] }
  0x1e   :  { %685 = vmatpush.bf16.msra.mxu2 %v1190_v6  ;;  %v1413_v45 = vld [vmem:[#allocation2 + $0x2e0] sm:$0xf]  ;;  %v1170_v46 = vor.u32 %v1538_v37, %v1167_v38  ;;  %v1601_v47 = vld [vmem:[#allocation2 + $0x2e4] sm:$0xf0]  ;;  %v1520_v48 = vld [vmem:[#allocation2 + $0x64] sm:$0xf]  ;;  %v1350_v53 = vor.u32 %v1585_v44, %v1349_v43 }
  0x1f   :  { %698 = vmatpush.bf16.msra.mxu3 %v1254_v10  ;;  %v1095_v49 = vld [vmem:[#allocation2 + $0x68] sm:$0xf0]  ;;  %v1536_v50 = vld [vmem:[#allocation2 + $0xe4] sm:$0xf]  ;;  %v43_v52 = vld [vmem:[%s1806_s0] sm:$0xff]  ;;  %v1414_v55 = vor.u32 %v1601_v47, %v1413_v45  ;;  %vm1016_vm3 = vcmask 523264  }
  0x20   :  { %660 = vmatpush.bf16.msra.mxu0 %v1054_v16  ;;  %v1159_v51 = vld [vmem:[#allocation2 + $0xe8] sm:$0xf0]  ;;  %v1341_v54 = vld [vmem:[#allocation2 + $0x250] sm:$0xf]  ;;  %49 = vst [vmem:[#allocation1] ss:$2 sm:$0xff] %v43_v52  ;;  %v1098_v56 = vor.u32 %v1520_v48, %v1095_v49 }
  0x21   :  { %673 = vmatpush.bf16.msra.mxu1 %v1118_v19  ;;  %v1583_v57 = vld [vmem:[#allocation2 + $0x254] sm:$0xf0]  ;;  %v1405_v58 = vld [vmem:[#allocation2 + $0x2d0] sm:$0xf]  ;;  %v1162_v60 = vor.u32 %v1536_v50, %v1159_v51  ;;  %v1518_v61 = vld [vmem:[#allocation2 + $0x54] sm:$0xf] }
  0x22   :  { %686 = vmatpush.bf16.msra.mxu2 %v1182_v20  ;;  %v1599_v59 = vld [vmem:[#allocation2 + $0x2d4] sm:$0xf0]  ;;  %v1087_v62 = vld [vmem:[#allocation2 + $0x58] sm:$0xf0]  ;;  %v44_v63 = vld [vmem:[%s1806_s0 + $0x8] sm:$0xff]  ;;  %v1342_v2 = vor.u32 %v1583_v57, %v1341_v54  ;;  %vm1036_vm5 = vcmask 11264  }
  0x23   :  { %699 = vmatpush.bf16.msra.mxu3 %v1246_v24  ;;  %v1534_v0 = vld [vmem:[#allocation2 + $0xd4] sm:$0xf]  ;;  %v1151_v1 = vld [vmem:[#allocation2 + $0xd8] sm:$0xf0]  ;;  %51 = vst [vmem:[#allocation1 + $0x10] ss:$2 sm:$0xff] %v44_v63  ;;  %v1406_v5 = vor.u32 %v1599_v59, %v1405_v58  ;;  %v1090_v6 = vor.u32 %v1518_v61, %v1087_v62 }
  0x24   :  { %661 = vmatpush.bf16.msra.mxu0 %v1046_v31  ;;  %v1333_v3 = vld [vmem:[#allocation2 + $0x240] sm:$0xf]  ;;  %v1581_v4 = vld [vmem:[#allocation2 + $0x244] sm:$0xf0]  ;;  %v1516_v9 = vld [vmem:[#allocation2 + $0x44] sm:$0xf]  ;;  %v1154_v10 = vor.u32 %v1534_v0, %v1151_v1 }
  0x25   :  { %674 = vmatpush.bf16.msra.mxu1 %v1110_v35  ;;  %v1397_v7 = vld [vmem:[#allocation2 + $0x2c0] sm:$0xf]  ;;  %v1597_v8 = vld [vmem:[#allocation2 + $0x2c4] sm:$0xf0]  ;;  %v1079_v11 = vld [vmem:[#allocation2 + $0x48] sm:$0xf0]  ;;  %v1334_v16 = vor.u32 %v1581_v4, %v1333_v3 }
  0x26   :  { %687 = vmatpush.bf16.msra.mxu2 %v1174_v36  ;;  %v1532_v12 = vld [vmem:[#allocation2 + $0xc4] sm:$0xf]  ;;  %v1143_v13 = vld [vmem:[#allocation2 + $0xc8] sm:$0xf0]  ;;  %v1325_v18 = vld [vmem:[#allocation2 + $0x230] sm:$0xf]  ;;  %v1398_v22 = vor.u32 %v1597_v8, %v1397_v7  ;;  %v1082_v23 = vor.u32 %v1516_v9, %v1079_v11 }
  0x27   :  { %700 = vmatpush.bf16.msra.mxu3 %v1238_v39  ;;  %v54_v14 = vld.sshfl [vmem:[#allocation1] sm:$0xff pattern:$0x75316420]  ;;  %v55_v15 = vld.sshfl [vmem:[#allocation1 + $0x8] sm:$0xff pattern:$0x75316420]  ;;  %v1146_v27 = vor.u32 %v1532_v12, %v1143_v13 }
  0x28   :  { %706 = vmatpush.bf16.msrb.mxu0 %v1358_v40  ;;  %v1707_v17 = vpack.c.bf16 %v54_v14, %v54_v14  ;;  %v1579_v19 = vld [vmem:[#allocation2 + $0x234] sm:$0xf0]  ;;  %v1389_v20 = vld [vmem:[#allocation2 + $0x2b0] sm:$0xf]  ;;  %v1709_v21 = vpack.c.bf16 %v55_v15, %v55_v15  ;;  %v1514_v25 = vld [vmem:[#allocation2 + $0x34] sm:$0xf] }
  0x29   :  { %719 = vmatpush.bf16.msrb.mxu1 %v1422_v41  ;;  %v1595_v24 = vld [vmem:[#allocation2 + $0x2b4] sm:$0xf0]  ;;  %v1071_v26 = vld [vmem:[#allocation2 + $0x38] sm:$0xf0]  ;;  %v1530_v30 = vld [vmem:[#allocation2 + $0xb4] sm:$0xf]  ;;  %v1326_v34 = vor.u32 %v1579_v19, %v1325_v18 }
  0x2a   :  { %732 = vmatpush.bf16.msrb.mxu2 %v1106_v42  ;;  %662 = vmatmul.bf16.vlgmr.msra.gmra.mxu0 %v1707_v17  ;;  %v56_v28 = vld.sshfl [vmem:[#allocation1 + $0x10] sm:$0xff pattern:$0x75316420]  ;;  %v57_v29 = vld.sshfl [vmem:[#allocation1 + $0x18] sm:$0xff pattern:$0x75316420]  ;;  %v1390_v35 = vor.u32 %v1595_v24, %v1389_v20  ;;  %v1074_v36 = vor.u32 %v1514_v25, %v1071_v26 }
  0x2b   :  { %745 = vmatpush.bf16.msrb.mxu3 %v1170_v46  ;;  %v1135_v31 = vld [vmem:[#allocation2 + $0xb8] sm:$0xf0]  ;;  %675 = vmatmul.bf16.vlgmr.msra.gmra.mxu1 %v1709_v21  ;;  %v1713_v32 = vpack.c.bf16 %v56_v28, %v56_v28  ;;  %v1715_v33 = vpack.c.bf16 %v57_v29, %v57_v29  ;;  %v1317_v37 = vld [vmem:[#allocation2 + $0x220] sm:$0xf]  ;;  %v1577_v38 = vld [vmem:[#allocation2 + $0x224] sm:$0xf0] }
  0x2c   :  { %707 = vmatpush.bf16.msrb.mxu0 %v1350_v53  ;;  %v1381_v39 = vld [vmem:[#allocation2 + $0x2a0] sm:$0xf]  ;;  %v1138_v40 = vor.u32 %v1530_v30, %v1135_v31  ;;  %v1593_v41 = vld [vmem:[#allocation2 + $0x2a4] sm:$0xf0]  ;;  %v1512_v42 = vld [vmem:[#allocation2 + $0x24] sm:$0xf]  ;;  %v1318_v47 = vor.u32 %v1577_v38, %v1317_v37 }
  0x2d   :  { %720 = vmatpush.bf16.msrb.mxu1 %v1414_v55  ;;  %688 = vmatmul.bf16.vlgmr.msra.gmra.mxu2 %v1713_v32  ;;  %v1063_v43 = vld [vmem:[#allocation2 + $0x28] sm:$0xf0]  ;;  %v1528_v44 = vld [vmem:[#allocation2 + $0xa4] sm:$0xf]  ;;  %v1382_v48 = vor.u32 %v1593_v41, %v1381_v39  ;;  %v1309_v50 = vld [vmem:[#allocation2 + $0x210] sm:$0xf] }
  0x2e   :  { %733 = vmatpush.bf16.msrb.mxu2 %v1098_v56  ;;  %v1127_v45 = vld [vmem:[#allocation2 + $0xa8] sm:$0xf0]  ;;  %701 = vmatmul.bf16.vlgmr.msra.gmra.mxu3 %v1715_v33  ;;  %v1066_v49 = vor.u32 %v1512_v42, %v1063_v43  ;;  %v1575_v51 = vld [vmem:[#allocation2 + $0x214] sm:$0xf0]  ;;  %v1373_v52 = vld [vmem:[#allocation2 + $0x290] sm:$0xf] }
  0x2f   :  { %746 = vmatpush.bf16.msrb.mxu3 %v1162_v60  ;;  %v45_v46 = vld [vmem:[%s1806_s0 + $0x10] sm:$0xff]  ;;  %v1130_v53 = vor.u32 %v1528_v44, %v1127_v45  ;;  %v1591_v54 = vld [vmem:[#allocation2 + $0x294] sm:$0xf0]  ;;  %v1510_v55 = vld [vmem:[#allocation2 + $0x14] sm:$0xf]  ;;  %v1310_v59 = vor.u32 %v1575_v51, %v1309_v50 }
  0x30   :  { %708 = vmatpush.bf16.msrb.mxu0 %v1342_v2  ;;  %53 = vst [vmem:[#allocation1 + $0x20] ss:$2 sm:$0xff] %v45_v46  ;;  %v1055_v56 = vld [vmem:[#allocation2 + $0x18] sm:$0xf0]  ;;  %v1526_v57 = vld [vmem:[#allocation2 + $0x94] sm:$0xf]  ;;  %v1374_v63 = vor.u32 %v1591_v54, %v1373_v52 }
  0x31   :  { %721 = vmatpush.bf16.msrb.mxu1 %v1406_v5  ;;  %v1119_v58 = vld [vmem:[#allocation2 + $0x98] sm:$0xf0]  ;;  %v1301_v60 = vld [vmem:[#allocation2 + $0x200] sm:$0xf]  ;;  %v1573_v61 = vld [vmem:[#allocation2 + $0x204] sm:$0xf0]  ;;  %v1058_v0 = vor.u32 %v1510_v55, %v1055_v56 }
  0x32   :  { %734 = vmatpush.bf16.msrb.mxu2 %v1090_v6  ;;  %v1365_v62 = vld [vmem:[#allocation2 + $0x280] sm:$0xf]  ;;  %v1589_v1 = vld [vmem:[#allocation2 + $0x284] sm:$0xf0]  ;;  %v1508_v2 = vld [vmem:[#allocation2 + $0x4] sm:$0xf]  ;;  %v1122_v4 = vor.u32 %v1526_v57, %v1119_v58  ;;  %v1302_v11 = vor.u32 %v1573_v61, %v1301_v60 }
  0x33   :  { %747 = vmatpush.bf16.msrb.mxu3 %v1154_v10  ;;  %v1047_v3 = vld [vmem:[#allocation2 + $0x8] sm:$0xf0]  ;;  %v1524_v5 = vld [vmem:[#allocation2 + $0x84] sm:$0xf]  ;;  %v1554_v7 = vld [vmem:[#allocation2 + $0x174] sm:$0xf]  ;;  %v1366_v15 = vor.u32 %v1589_v1, %v1365_v62 }
  0x34   :  { %709 = vmatpush.bf16.msrb.mxu0 %v1334_v16  ;;  %v1111_v6 = vld [vmem:[#allocation2 + $0x88] sm:$0xf0]  ;;  %v1231_v8 = vld [vmem:[#allocation2 + $0x178] sm:$0xf0]  ;;  %v1570_v9 = vld [vmem:[#allocation2 + $0x1f4] sm:$0xf]  ;;  %v1050_v16 = vor.u32 %v1508_v2, %v1047_v3 }
  0x35   :  { %722 = vmatpush.bf16.msrb.mxu1 %v1398_v22  ;;  %v1295_v10 = vld [vmem:[#allocation2 + $0x1f8] sm:$0xf0]  ;;  %v1586_v12 = vld [vmem:[#allocation2 + $0x274] sm:$0xf]  ;;  %v1114_v20 = vor.u32 %v1524_v5, %v1111_v6  ;;  %v1234_v22 = vor.u32 %v1554_v7, %v1231_v8  ;;  %v1552_v26 = vld [vmem:[#allocation2 + $0x164] sm:$0xf] }
  0x36   :  { %735 = vmatpush.bf16.msrb.mxu2 %v1082_v23  ;;  %v1359_v13 = vld [vmem:[#allocation2 + $0x278] sm:$0xf0]  ;;  %v1602_v14 = vld [vmem:[#allocation2 + $0x2f4] sm:$0xf]  ;;  %v1298_v24 = vor.u32 %v1570_v9, %v1295_v10  ;;  %v1568_v28 = vld [vmem:[#allocation2 + $0x1e4] sm:$0xf] }
  0x37   :  { %748 = vmatpush.bf16.msrb.mxu3 %v1146_v27  ;;  %v1423_v18 = vld [vmem:[#allocation2 + $0x2f8] sm:$0xf0]  ;;  %v59_v23 = vld.sshfl [vmem:[#allocation1 + $0x28] sm:$0xff pattern:$0x75316420]  ;;  %v1362_v25 = vor.u32 %v1586_v12, %v1359_v13 }
  0x38   :  { %710 = vmatpush.bf16.msrb.mxu0 %v1326_v34  ;;  %v58_v19 = vld.sshfl [vmem:[#allocation1 + $0x20] sm:$0xff pattern:$0x75316420]  ;;  %v1223_v27 = vld [vmem:[#allocation2 + $0x168] sm:$0xf0]  ;;  %v1426_v29 = vor.u32 %v1602_v14, %v1423_v18 }
  0x39   :  { %723 = vmatpush.bf16.msrb.mxu1 %v1390_v35  ;;  %v1722_v30 = vpack.c.bf16 %v58_v19, %v58_v19  ;;  %v1287_v31 = vld [vmem:[#allocation2 + $0x1e8] sm:$0xf0]  ;;  %v1584_v34 = vld [vmem:[#allocation2 + $0x264] sm:$0xf]  ;;  %v1226_v39 = vor.u32 %v1552_v26, %v1223_v27  ;;  %v1550_v42 = vld [vmem:[#allocation2 + $0x154] sm:$0xf] }
  0x3a   :  { %736 = vmatpush.bf16.msrb.mxu2 %v1074_v36  ;;  %v1351_v35 = vld [vmem:[#allocation2 + $0x268] sm:$0xf0]  ;;  %v1724_v36 = vpack.c.bf16 %v59_v23, %v59_v23  ;;  %v1600_v37 = vld [vmem:[#allocation2 + $0x2e4] sm:$0xf]  ;;  %v1215_v43 = vld [vmem:[#allocation2 + $0x158] sm:$0xf0] }
  0x3b   :  { %749 = vmatpush.bf16.msrb.mxu3 %v1138_v40  ;;  %v1415_v38 = vld [vmem:[#allocation2 + $0x2e8] sm:$0xf0]  ;;  %v1290_v40 = vor.u32 %v1568_v28, %v1287_v31  ;;  %v1354_v41 = vor.u32 %v1584_v34, %v1351_v35  ;;  %v1566_v44 = vld [vmem:[#allocation2 + $0x1d4] sm:$0xf]  ;;  %v1279_v46 = vld [vmem:[#allocation2 + $0x1d8] sm:$0xf0]  ;;  %v1218_v51 = vor.u32 %v1550_v42, %v1215_v43 }
  0x3c   :  { %711 = vmatpush.bf16.msrb.mxu0 %v1318_v47  ;;  %v1418_v45 = vor.u32 %v1600_v37, %v1415_v38  ;;  %v1582_v47 = vld [vmem:[#allocation2 + $0x254] sm:$0xf]  ;;  %v1407_v50 = vld [vmem:[#allocation2 + $0x2d8] sm:$0xf0]  ;;  %v1548_v52 = vld [vmem:[#allocation2 + $0x144] sm:$0xf] }
  0x3d   :  { %724 = vmatpush.bf16.msrb.mxu1 %v1382_v48  ;;  %v1343_v48 = vld [vmem:[#allocation2 + $0x258] sm:$0xf0]  ;;  %v1207_v55 = vld [vmem:[#allocation2 + $0x148] sm:$0xf0]  ;;  %v1564_v56 = vld [vmem:[#allocation2 + $0x1c4] sm:$0xf] }
  0x3e   :  { %737 = vmatpush.bf16.msrb.mxu2 %v1066_v49  ;;  %v1598_v49 = vld [vmem:[#allocation2 + $0x2d4] sm:$0xf]  ;;  %v1346_v54 = vor.u32 %v1582_v47, %v1343_v48  ;;  %v1271_v57 = vld [vmem:[#allocation2 + $0x1c8] sm:$0xf0]  ;;  %v1596_v61 = vld [vmem:[#allocation2 + $0x2c4] sm:$0xf]  ;;  %v1210_v62 = vor.u32 %v1548_v52, %v1207_v55 }
  0x3f   :  { %750 = vmatpush.bf16.msrb.mxu3 %v1130_v53  ;;  %v1282_v53 = vor.u32 %v1566_v44, %v1279_v46  ;;  %v1410_v58 = vor.u32 %v1598_v49, %v1407_v50  ;;  %v1335_v60 = vld [vmem:[#allocation2 + $0x248] sm:$0xf0]  ;;  %v1199_v1 = vld [vmem:[#allocation2 + $0x138] sm:$0xf0]  ;;  %v1562_v2 = vld [vmem:[#allocation2 + $0x1b4] sm:$0xf] }
  0x40   :  { %712 = vmatpush.bf16.msrb.mxu0 %v1310_v59  ;;  %v1580_v59 = vld [vmem:[#allocation2 + $0x244] sm:$0xf]  ;;  %v1578_v5 = vld [vmem:[#allocation2 + $0x234] sm:$0xf]  ;;  %v1327_v6 = vld [vmem:[#allocation2 + $0x238] sm:$0xf0] }
  0x41   :  { %725 = vmatpush.bf16.msrb.mxu1 %v1374_v63  ;;  %v1274_v63 = vor.u32 %v1564_v56, %v1271_v57  ;;  %v1594_v7 = vld [vmem:[#allocation2 + $0x2b4] sm:$0xf]  ;;  %v1391_v8 = vld [vmem:[#allocation2 + $0x2b8] sm:$0xf0]  ;;  %v1544_v12 = vld [vmem:[#allocation2 + $0x124] sm:$0xf] }
  0x42   :  { %738 = vmatpush.bf16.msrb.mxu2 %v1058_v0  ;;  %v1546_v0 = vld [vmem:[#allocation2 + $0x134] sm:$0xf]  ;;  %v1191_v13 = vld [vmem:[#allocation2 + $0x128] sm:$0xf0]  ;;  %v1560_v14 = vld [vmem:[#allocation2 + $0x1a4] sm:$0xf] }
  0x43   :  { %751 = vmatpush.bf16.msrb.mxu3 %v1122_v4  ;;  %v1263_v4 = vld [vmem:[#allocation2 + $0x1b8] sm:$0xf0]  ;;  %v1202_v9 = vor.u32 %v1546_v0, %v1199_v1  ;;  %v1576_v18 = vld [vmem:[#allocation2 + $0x224] sm:$0xf]  ;;  %v1319_v19 = vld [vmem:[#allocation2 + $0x228] sm:$0xf0]  ;;  %v1194_v23 = vor.u32 %v1544_v12, %v1191_v13 }
  0x44   :  { %713 = vmatpush.bf16.msrb.mxu0 %v1302_v11  ;;  %v1266_v10 = vor.u32 %v1562_v2, %v1263_v4  ;;  %v1330_v11 = vor.u32 %v1578_v5, %v1327_v6  ;;  %v1542_v26 = vld [vmem:[#allocation2 + $0x114] sm:$0xf]  ;;  %v1183_v27 = vld [vmem:[#allocation2 + $0x118] sm:$0xf0]  ;;  %v1540_v42 = vld [vmem:[#allocation2 + $0x104] sm:$0xf] }
  0x45   :  { %726 = vmatpush.bf16.msrb.mxu1 %v1366_v15  ;;  %v1394_v15 = vor.u32 %v1594_v7, %v1391_v8  ;;  %v1558_v28 = vld [vmem:[#allocation2 + $0x194] sm:$0xf]  ;;  %v1247_v31 = vld [vmem:[#allocation2 + $0x198] sm:$0xf0]  ;;  %v1175_v43 = vld [vmem:[#allocation2 + $0x108] sm:$0xf0] }
  0x46   :  { %739 = vmatpush.bf16.msrb.mxu2 %v1050_v16  ;;  %v1255_v16 = vld [vmem:[#allocation2 + $0x1a8] sm:$0xf0]  ;;  %v1574_v34 = vld [vmem:[#allocation2 + $0x214] sm:$0xf]  ;;  %v1311_v35 = vld [vmem:[#allocation2 + $0x218] sm:$0xf0] }
  0x47   :  { %752 = vmatpush.bf16.msrb.mxu3 %v1114_v20  ;;  %714 = vmatmul.bf16.vlgmr.msrb.gmra.mxu0 %v1722_v30  ;;  %v1592_v20 = vld [vmem:[#allocation2 + $0x2a4] sm:$0xf]  ;;  %v1590_v37 = vld [vmem:[#allocation2 + $0x294] sm:$0xf]  ;;  %v1375_v38 = vld [vmem:[#allocation2 + $0x298] sm:$0xf0] }
  0x48   :  { %758 = vmatpush.bf16.msra.mxu0 %v1234_v22  ;;  %727 = vmatmul.bf16.vlgmr.msrb.gmra.mxu1 %v1724_v36  ;;  %v1383_v22 = vld [vmem:[#allocation2 + $0x2a8] sm:$0xf0]  ;;  %v1556_v44 = vld [vmem:[#allocation2 + $0x184] sm:$0xf]  ;;  %v1611_v55 = vld [vmem:[%s1809_s3 + $0x38] sm:$0xff] }
  0x49   :  { %771 = vmatpush.bf16.msra.mxu1 %v1298_v24  ;;  %740 = vmatmul.bf16.vlgmr.msrb.gmra.mxu2 %v1707_v17  ;;  %v1399_v17 = vld [vmem:[#allocation2 + $0x2c8] sm:$0xf0]  ;;  %v1258_v24 = vor.u32 %v1560_v14, %v1255_v16  ;;  %v1572_v47 = vld [vmem:[#allocation2 + $0x204] sm:$0xf]  ;;  %v1616_v4 = vld [vmem:[%s1809_s3 + $0x60] sm:$0xff] }
  0x4a   :  { %784 = vmatpush.bf16.msra.mxu2 %v1362_v25  ;;  %753 = vmatmul.bf16.vlgmr.msrb.gmra.mxu3 %v1709_v21  ;;  %v1338_v21 = vor.u32 %v1580_v59, %v1335_v60  ;;  %v1402_v3 = vor.u32 %v1596_v61, %v1399_v17  ;;  %v1322_v25 = vor.u32 %v1576_v18, %v1319_v19  ;;  %v1239_v46 = vld [vmem:[#allocation2 + $0x188] sm:$0xf0]  ;;  %v1588_v49 = vld [vmem:[#allocation2 + $0x284] sm:$0xf]  ;;  %v168_v59 = vld [vmem:[%s1808_s2] sm:$0x3] }
  0x4b   :  { %797 = vmatpush.bf16.msra.mxu3 %v1426_v29  ;;  %v1386_v29 = vor.u32 %v1592_v20, %v1383_v22  ;;  %v1303_v48 = vld [vmem:[#allocation2 + $0x208] sm:$0xf0]  ;;  %v1242_v52 = vor.u32 %v1556_v44, %v1239_v46  ;;  %v1609_v57 = vld [vmem:[%s1809_s3 + $0x28] sm:$0xff]  ;;  %v1619_v61 = vld [vmem:[%s1809_s3 + $0x78] sm:$0xff] }
  0x4c   :  { %759 = vmatpush.bf16.msra.mxu0 %v1226_v39  ;;  %v1186_v39 = vor.u32 %v1542_v26, %v1183_v27  ;;  %v1367_v50 = vld [vmem:[#allocation2 + $0x288] sm:$0xf0]  ;;  %v1613_v19 = vld [vmem:[%s1809_s3 + $0x48] sm:$0xff]  ;;  %v1612_v27 = vld [vmem:[%s1809_s3 + $0x40] sm:$0xff] }
  0x4d   :  { %772 = vmatpush.bf16.msra.mxu1 %v1290_v40  ;;  %v1250_v40 = vor.u32 %v1558_v28, %v1247_v31  ;;  %v1610_v56 = vld [vmem:[%s1809_s3 + $0x30] sm:$0xff]  ;;  %v171_v31 = vperm.slane %v168_v59, 1 }
  0x4e   :  { %785 = vmatpush.bf16.msra.mxu2 %v1354_v41  ;;  %v1314_v41 = vor.u32 %v1574_v34, %v1311_v35  ;;  %v1614_v13 = vld [vmem:[%s1809_s3 + $0x50] sm:$0xff] }
  0x4f   :  { %798 = vmatpush.bf16.msra.mxu3 %v1418_v45  ;;  %v1378_v45 = vor.u32 %v1590_v37, %v1375_v38 }
  0x50   :  { %760 = vmatpush.bf16.msra.mxu0 %v1218_v51  ;;  %v1178_v51 = vor.u32 %v1540_v42, %v1175_v43 }
  0x51   :  { %773 = vmatpush.bf16.msra.mxu1 %v1282_v53  ;;  %v1306_v53 = vor.u32 %v1572_v47, %v1303_v48 }
  0x52   :  { %786 = vmatpush.bf16.msra.mxu2 %v1346_v54  ;;  %v1370_v54 = vor.u32 %v1588_v49, %v1367_v50 }
  0x53   :  { %799 = vmatpush.bf16.msra.mxu3 %v1410_v58  ;;  %v1608_v58 = vld [vmem:[%s1809_s3 + $0x20] sm:$0xff] }
  0x54   :  { %761 = vmatpush.bf16.msra.mxu0 %v1210_v62  ;;  %v1618_v62 = vld [vmem:[%s1809_s3 + $0x70] sm:$0xff] }
  0x55   :  { %774 = vmatpush.bf16.msra.mxu1 %v1274_v63  ;;  %v170_v63 = vperm.slane %v168_v59, 0 }
  0x56   :  { %787 = vmatpush.bf16.msra.mxu2 %v1338_v21  ;;  %v1617_v21 = vld [vmem:[%s1809_s3 + $0x68] sm:$0xff] }
  0x57   :  { %800 = vmatpush.bf16.msra.mxu3 %v1402_v3 }
  0x58   :  { %762 = vmatpush.bf16.msra.mxu0 %v1202_v9 }
  0x59   :  { %775 = vmatpush.bf16.msra.mxu1 %v1266_v10 }
  0x5a   :  { %788 = vmatpush.bf16.msra.mxu2 %v1330_v11  ;;  %v1615_v11 = vld [vmem:[%s1809_s3 + $0x58] sm:$0xff] }
  0x5b   :  { %801 = vmatpush.bf16.msra.mxu3 %v1394_v15 }
  0x5c   :  { %763 = vmatpush.bf16.msra.mxu0 %v1194_v23 }
  0x5d   :  { %776 = vmatpush.bf16.msra.mxu1 %v1258_v24 }
  0x5e   :  { %789 = vmatpush.bf16.msra.mxu2 %v1322_v25 }
  0x5f   :  { %802 = vmatpush.bf16.msra.mxu3 %v1386_v29 }
  0x60   :  { %764 = vmatpush.bf16.msra.mxu0 %v1186_v39 }
  0x61   :  { %777 = vmatpush.bf16.msra.mxu1 %v1250_v40 }
  0x62   :  { %790 = vmatpush.bf16.msra.mxu2 %v1314_v41 }
  0x63   :  { %803 = vmatpush.bf16.msra.mxu3 %v1378_v45 }
  0x64   :  { %765 = vmatpush.bf16.msra.mxu0 %v1178_v51 }
  0x65   :  { %778 = vmatpush.bf16.msra.mxu1 %v1242_v52  ;;  %v1623_v52 = vld [vmem:[%s1811_s5 + $0x18] sm:$0xff] }
  0x66   :  { %791 = vmatpush.bf16.msra.mxu2 %v1306_v53  ;;  %v1622_v53 = vld [vmem:[%s1811_s5 + $0x10] sm:$0xff] }
  0x67   :  { %804 = vmatpush.bf16.msra.mxu3 %v1370_v54  ;;  %766 = vmatmul.bf16.vlgmr.msra.gmra.mxu0 %v1713_v32  ;;  %v1607_v32 = vld [vmem:[%s1809_s3 + $0x18] sm:$0xff] }
  0x68   :  { %950 = vmatpush.bf16.msrb.mxu0 %v1611_v55  ;;  %779 = vmatmul.bf16.vlgmr.msra.gmra.mxu1 %v1715_v33  ;;  %v1606_v33 = vld [vmem:[%s1809_s3 + $0x10] sm:$0xff]  ;;  %v1621_v55 = vld [vmem:[%s1811_s5 + $0x8] sm:$0xff] }
  0x69   :  { %792 = vmatmul.bf16.vlgmr.msra.gmra.mxu2 %v1722_v30  ;;  %v1605_v30 = vld [vmem:[%s1809_s3 + $0x8] sm:$0xff]  ;;  %963 = vmatpush.bf16.msrb.mxu1 %v1619_v61 }
  0x6a   :  { %805 = vmatmul.bf16.vlgmr.msra.gmra.mxu3 %v1724_v36  ;;  %v1604_v36 = vld [vmem:[%s1809_s3] sm:$0xff]  ;;  %1024 = vmatpush.bf16.msrb.mxu2 %v1623_v52 }
  0x6c   :  { %951 = vmatpush.bf16.msrb.mxu0 %v1610_v56 }
  0x6d   :  { %964 = vmatpush.bf16.msrb.mxu1 %v1618_v62 }
  0x6e   :  { %1025 = vmatpush.bf16.msrb.mxu2 %v1622_v53 }
  0x70   :  { %952 = vmatpush.bf16.msrb.mxu0 %v1609_v57  ;;  %v1620_v57 = vld [vmem:[%s1811_s5] sm:$0xff] }
  0x71   :  { %965 = vmatpush.bf16.msrb.mxu1 %v1617_v21 }
  0x72   :  { %1026 = vmatpush.bf16.msrb.mxu2 %v1621_v55 }
  0x74   :  { %953 = vmatpush.bf16.msrb.mxu0 %v1608_v58  ;;  %v1627_v58 = vld [vmem:[%s1810_s4] ss:$0 sm:$0xff] }
  0x75   :  { %966 = vmatpush.bf16.msrb.mxu1 %v1616_v4 }
  0x76   :  { %1027 = vmatpush.bf16.msrb.mxu2 %v1620_v57 }
  0x78   :  { %954 = vmatpush.bf16.msrb.mxu0 %v1607_v32 }
  0x79   :  { %967 = vmatpush.bf16.msrb.mxu1 %v1615_v11 }
  0x7c   :  { %955 = vmatpush.bf16.msrb.mxu0 %v1606_v33 }
  0x7d   :  { %968 = vmatpush.bf16.msrb.mxu1 %v1614_v13 }
  0x80   :  { %956 = vmatpush.bf16.msrb.mxu0 %v1605_v30 }
  0x81   :  { %969 = vmatpush.bf16.msrb.mxu1 %v1613_v19 }
  0x84   :  { %957 = vmatpush.bf16.msrb.mxu0 %v1604_v36 }
  0x85   :  { %970 = vmatpush.bf16.msrb.mxu1 %v1612_v27 }
  0xa7   :  { %v663_v60 = vpop.f32.mrf.mxu0 }
  0xa8   :  { %v676_v17 = vpop.f32.mrf.mxu1  ;;  %v664_v0 = vadd.f32 %v663_v60, %v170_v63 }
  0xaa   :  { %v677_v5 = vadd.f32 %v676_v17, %v664_v0  ;;  %v1628_v17 = vld [vmem:[%s1812_s6] ss:$0 sm:$0xff] }
  0xaf   :  { %v665_v1 = vpop.f32.mrf.mxu0 }
  0xb0   :  { %v678_v2 = vpop.f32.mrf.mxu1  ;;  %v689_v3 = vpop.f32.mrf.mxu2 }
  0xb1   :  { %v702_v6 = vpop.f32.mrf.mxu3  ;;  %v690_v7 = vadd.f32 %v689_v3, %v677_v5 }
  0xb3   :  { %v703_v9 = vadd.f32 %v702_v6, %v690_v7 }
  0xb8   :  { %v691_v8 = vpop.f32.mrf.mxu2 }
  0xb9   :  { %v704_v10 = vpop.f32.mrf.mxu3 }
  0xc4   :  { %v715_v12 = vpop.f32.mrf.mxu0 }
  0xc5   :  { %v716_v14 = vadd.f32 %v715_v12, %v703_v9  ;;  %v728_v15 = vpop.f32.mrf.mxu1 }
  0xc7   :  { %v729_v16 = vadd.f32 %v728_v15, %v716_v14 }
  0xc9   :  { %vm810_vm0 = vcmp.ge.f32.partialorder %v729_v16, 0.0  ;;  %v812_v18 = vmul.f32 0.01, %v729_v16 }
  0xcb   :  { %v814_v20 = vsel %vm810_vm0, %v729_v16, %v812_v18 }
  0xcc   :  { %v741_v22 = vpop.f32.mrf.mxu2  ;;  %v816_v23 = vpack.c.bf16 %v814_v20, %v814_v20  ;;  %v717_v25 = vpop.f32.mrf.mxu0 }
  0xcd   :  { %v754_v24 = vpop.f32.mrf.mxu3  ;;  %v730_v26 = vpop.f32.mrf.mxu1  ;;  %v742_v34 = vadd.f32 %v741_v22, %v171_v31 }
  0xce   :  { %958 = vmatmul.bf16.vlgmr.msrb.gmra.mxu0 %v816_v23 }
  0xcf   :  { %v755_v35 = vadd.f32 %v754_v24, %v742_v34 }
  0xd4   :  { %v743_v28 = vpop.f32.mrf.mxu2 }
  0xd5   :  { %v756_v29 = vpop.f32.mrf.mxu3 }
  0xe4   :  { %v767_v37 = vpop.f32.mrf.mxu0 }
  0xe5   :  { %v780_v38 = vpop.f32.mrf.mxu1  ;;  %v768_v39 = vadd.f32 %v767_v37, %v755_v35 }
  0xe7   :  { %v781_v40 = vadd.f32 %v780_v38, %v768_v39 }
  0xec   :  { %v793_v41 = vpop.f32.mrf.mxu2  ;;  %v769_v44 = vpop.f32.mrf.mxu0 }
  0xed   :  { %v794_v42 = vadd.f32 %v793_v41, %v781_v40  ;;  %v806_v43 = vpop.f32.mrf.mxu3  ;;  %v782_v45 = vpop.f32.mrf.mxu1 }
  0xef   :  { %v807_v46 = vadd.f32 %v806_v43, %v794_v42 }
  0xf1   :  { %vm811_vm1 = vcmp.ge.f32.partialorder %v807_v46, 0.0  ;;  %v813_v47 = vmul.f32 0.01, %v807_v46 }
  0xf3   :  { %v815_v48 = vsel %vm811_vm1, %v807_v46, %v813_v47 }
  0xf4   :  { %v817_v49 = vpack.c.bf16 %v815_v48, %v815_v48  ;;  %v795_v50 = vpop.f32.mrf.mxu2 }
  0xf5   :  { %v808_v51 = vpop.f32.mrf.mxu3 }
  0xf6   :  { %971 = vmatmul.bf16.vlgmr.msrb.gmra.mxu1 %v817_v49 }
 0x14b   :  { %v959_v54 = vpop.f32.mrf.mxu0 }
 0x14c   :  { %v960_v32 = vadd.f32 %v1627_v58, %v959_v54 }
 0x153   :  { %v961_v56 = vpop.f32.mrf.mxu0 }
 0x173   :  { %v972_v33 = vpop.f32.mrf.mxu1 }
 0x174   :  { %v973_v30 = vadd.f32 %v972_v33, %v960_v32 }
 0x176   :  { %vm976_vm2 = vcmp.ge.f32.partialorder %v973_v30, 0.0  ;;  %v977_v36 = vmul.f32 0.01, %v973_v30 }
 0x178   :  { %v978_v59 = vsel %vm976_vm2, %v973_v30, %v977_v36 }
 0x179   :  { %v979_v60 = vpack.c.bf16 %v978_v59, %v978_v59 }
 0x17b   :  { %v974_v61 = vpop.f32.mrf.mxu1  ;;  %1507 = vmatmul.msk.bf16.vlgmr.msrb.gmra.mxu2 %vm1016_vm3, %v979_v60 }
 0x1fe   :  { %v1029_v62 = vpop.f32.mrf.mxu2 }
 0x1ff   :  { %v1030_v63 = vadd.f32 %v1628_v17, %v1029_v62 }
 0x201   :  { %vm1033_vm4 = vcmp.ge.f32.partialorder %v1030_v63, 0.0  ;;  %v1034_v21 = vmul.f32 0.01, %v1030_v63 }
 0x203   :  { %v1035_v0 = vsel %vm1033_vm4, %v1030_v63, %v1034_v21 }
 0x204   :  { %1037 = vst.msk [vmem:[%s1813_s7] sm:$0xf] %vm1036_vm5, %v1035_v0 }
 0x206   :  { %v1031_v1 = vpop.f32.mrf.mxu2 }
 0x207   :  { %1042 = vsyncpa [#allocation3], 1 }

</bundles_post_ra>
